<compile_context>
chip_gen: v6e
topology: v6e:2x2x1
jax: 0.10.0
libtpu: 0.0.40
codegen_flags: <defaults>
</compile_context>

<pallas_src>
import jax
import jax.numpy as jnp
from jax.experimental import pallas as pl
from jax.experimental.pallas import tpu as pltpu

_LOG_CLAMP = -100.0  # torch.nn.BCELoss clamps each log term at -100


def _bce_partial_sum_kernel(pre_ref, label_ref, acc_ref):
    """Accumulate per-(sublane, lane) partial sums of the BCE terms.

    grid = (parallel_splits, batch_tiles); axis 1 is the reduction axis, so the
    (8, Cp) output block is resident across it and acts as the accumulator.
    """
    @pl.when(pl.program_id(1) == 0)
    def _init():
        acc_ref[...] = jnp.zeros_like(acc_ref)

    # Inputs may be stored narrow in HBM (bf16 pre / int8 label); math in f32.
    p = pre_ref[...].astype(jnp.float32)
    y = label_ref[...].astype(jnp.float32)

    # nn.BCELoss: clamp each log term at -100 (also makes zero padding exact).
    log_p = jnp.maximum(jnp.log(p), _LOG_CLAMP)
    log_1mp = jnp.maximum(jnp.log(1.0 - p), _LOG_CLAMP)
    term = y * log_p + (1.0 - y) * log_1mp                    # (TB, Cp)

    # Fold (TB, Cp) -> (8, Cp) with pure VPU slab adds; the cross-lane reduce
    # happens once in the wrapper on the tiny partial-sum array.
    tb = term.shape[0]
    partial = term[0:8, :]
    for k in range(1, tb // 8):
        partial = partial + term[k * 8:(k + 1) * 8, :]
    acc_ref[...] += partial


def _round_up(x, m):
    return (x + m - 1) // m * m


def multi_bce_loss(pre, label, *, parallel_splits=2, target_rows=512,
                   vmem_limit_bytes=32 * 1024 * 1024):
    """Pallas equivalent of MultiBceLoss.forward: BCELoss(pre.squeeze(), label)."""
    pre = jnp.squeeze(pre)                 # module does pre.squeeze()
    assert pre.shape == label.shape

    # Flatten to 2D (rows, classes) for lane-aligned streaming.
    if pre.ndim == 0:
        pre = pre.reshape(1, 1)
        label = label.reshape(1, 1)
    elif pre.ndim == 1:
        pre = pre.reshape(1, -1)
        label = label.reshape(1, -1)
    elif pre.ndim > 2:
        pre = pre.reshape(-1, pre.shape[-1])
        label = label.reshape(-1, label.shape[-1])

    B, C = pre.shape
    n_elems = B * C                        # ORIGINAL element count for the mean

    Cp = _round_up(C, 128)
    # TODO(synk): for extremely wide C (8 * Cp * 4B > ~4 MiB) also tile the class dim.
    max_rows = max(8, ((4 * 1024 * 1024) // (Cp * 4)) // 8 * 8)  # <= ~4 MiB / input block
    TB = max(8, min(target_rows, max_rows) // 8 * 8)
    rows_per_split = _round_up(-(-B // parallel_splits), 8)
    TB = min(TB, rows_per_split)
    Bp = _round_up(B, parallel_splits * TB)
    tiles = Bp // (parallel_splits * TB)

    if (Bp, Cp) != (B, C):
        # Zero padding contributes exactly 0 to the sum:
        #   y=0, p=0  ->  0*max(log 0, -100) + 1*log(1) = 0
        pre = jnp.pad(pre, ((0, Bp - B), (0, Cp - C)))
        label = jnp.pad(label, ((0, Bp - B), (0, Cp - C)))

    partials = pl.pallas_call(
        _bce_partial_sum_kernel,
        out_shape=jax.ShapeDtypeStruct((parallel_splits * 8, Cp), jnp.float32),
        grid_spec=pltpu.PrefetchScalarGridSpec(
            num_scalar_prefetch=0,
            grid=(parallel_splits, tiles),
            in_specs=[
                pl.BlockSpec((TB, Cp), lambda s, i: (s * tiles + i, 0)),  # pre
                pl.BlockSpec((TB, Cp), lambda s, i: (s * tiles + i, 0)),  # label
            ],
            out_specs=pl.BlockSpec((8, Cp), lambda s, i: (s, 0)),  # resident accumulator
        ),
        compiler_params=pltpu.CompilerParams(
            dimension_semantics=("parallel", "arbitrary"),
            vmem_limit_bytes=vmem_limit_bytes,
        ),
    )(pre, label)

    # Tiny epilogue in JAX: sum per-core/per-lane partials, negate, divide by
    # the unpadded element count.
    total = jnp.sum(partials)
    return -total / jnp.float32(n_elems)


def _ref_loss(pre, label):
    """Pure-JAX reference matching torch.nn.BCELoss (mean reduction)."""
    log_p = jnp.maximum(jnp.log(pre), _LOG_CLAMP)
    log_1mp = jnp.maximum(jnp.log(1.0 - pre), _LOG_CLAMP)
    return -jnp.mean(label * log_p + (1.0 - label) * log_1mp)


if __name__ == "__main__":
    key = jax.random.PRNGKey(0)
    k1, k2 = jax.random.split(key)

    B, C = 16, 64
    # The module squeezes `pre`, so feed it with a trailing singleton dim.
    pre = jax.nn.sigmoid(jax.random.normal(k1, (B, C, 1), dtype=jnp.float32))
    label = (jax.random.uniform(k2, (B, C)) > 0.5).astype(jnp.float32)

    loss = multi_bce_loss(pre, label)
    loss = jax.block_until_ready(loss)

    # Sanity: finite scalar.
    assert not bool(jnp.isnan(loss)) and not bool(jnp.isinf(loss))

    ref = _ref_loss(jnp.squeeze(pre), label)
    assert jnp.allclose(loss, ref, rtol=1e-5, atol=1e-6), (loss, ref)

    print("KERNEL_OK")
</pallas_src>

<mosaic_0001>
module attributes {stable_mosaic.version = 11 : i64} {
  func.func @_bce_partial_sum_kernel(%arg0: i32, %arg1: i32, %arg2: memref<8x128xf32, #tpu.memory_space<vmem>>, %arg3: memref<8x128xf32, #tpu.memory_space<vmem>>, %arg4: memref<8x128xf32, #tpu.memory_space<vmem>>) attributes {dimension_semantics = [#tpu.dimension_semantics<parallel>, #tpu.dimension_semantics<arbitrary>], iteration_bounds = array<i64: 2, 1>, scalar_prefetch = 0 : i64, scratch_operands = 0 : i64, tpu.core_type = #tpu.core_type<tc>, window_params = [{transform_indices = @transform_0, window_bounds = array<i64: 8, 128>}, {transform_indices = @transform_1, window_bounds = array<i64: 8, 128>}, {transform_indices = @transform_2, window_bounds = array<i64: 8, 128>}]} {
    %c0_i32 = arith.constant 0 : i32
    %0 = arith.cmpi eq, %arg1, %c0_i32 : i32
    %1 = arith.extui %0 : i1 to i32
    %c0_i32_0 = arith.constant 0 : i32
    %2 = arith.cmpi ne, %1, %c0_i32_0 : i32
    scf.if %2 {
      %cst_11 = arith.constant 0.000000e+00 : f32
      %21 = vector.broadcast %cst_11 : f32 to vector<8x128xf32>
      %c0_12 = arith.constant 0 : index
      %c0_13 = arith.constant 0 : index
      %22 = vector.load %arg4[%c0_12, %c0_13] : memref<8x128xf32, #tpu.memory_space<vmem>>, vector<8x128xf32>
      tpu.vector_store %arg4[%c0_12, %c0_13], %21 {strides = array<i32>} : memref<8x128xf32, #tpu.memory_space<vmem>>, vector<8x128xf32>,
    } else {
    }
    %c0 = arith.constant 0 : index
    %c0_1 = arith.constant 0 : index
    %3 = vector.load %arg2[%c0, %c0_1] : memref<8x128xf32, #tpu.memory_space<vmem>>, vector<8x128xf32>
    %c0_2 = arith.constant 0 : index
    %c0_3 = arith.constant 0 : index
    %4 = vector.load %arg3[%c0_2, %c0_3] : memref<8x128xf32, #tpu.memory_space<vmem>>, vector<8x128xf32>
    %5 = math.log %3 : vector<8x128xf32>
    %cst = arith.constant -1.000000e+02 : f32
    %6 = vector.broadcast %cst : f32 to vector<8x128xf32>
    %7 = arith.maximumf %5, %6 : vector<8x128xf32>
    %cst_4 = arith.constant 1.000000e+00 : f32
    %8 = vector.broadcast %cst_4 : f32 to vector<8x128xf32>
    %9 = arith.subf %8, %3 : vector<8x128xf32>
    %10 = math.log %9 : vector<8x128xf32>
    %cst_5 = arith.constant -1.000000e+02 : f32
    %11 = vector.broadcast %cst_5 : f32 to vector<8x128xf32>
    %12 = arith.maximumf %10, %11 : vector<8x128xf32>
    %13 = arith.mulf %4, %7 : vector<8x128xf32>
    %cst_6 = arith.constant 1.000000e+00 : f32
    %14 = vector.broadcast %cst_6 : f32 to vector<8x128xf32>
    %15 = arith.subf %14, %4 : vector<8x128xf32>
    %16 = arith.mulf %15, %12 : vector<8x128xf32>
    %17 = arith.addf %13, %16 : vector<8x128xf32>
    %c0_7 = arith.constant 0 : index
    %c0_8 = arith.constant 0 : index
    %18 = vector.load %arg4[%c0_7, %c0_8] : memref<8x128xf32, #tpu.memory_space<vmem>>, vector<8x128xf32>
    %19 = arith.addf %18, %17 : vector<8x128xf32>
    %c0_9 = arith.constant 0 : index
    %c0_10 = arith.constant 0 : index
    %20 = vector.load %arg4[%c0_9, %c0_10] : memref<8x128xf32, #tpu.memory_space<vmem>>, vector<8x128xf32>
    tpu.vector_store %arg4[%c0_9, %c0_10], %19 {strides = array<i32>} : memref<8x128xf32, #tpu.memory_space<vmem>>, vector<8x128xf32>,
    return
  }
  func.func @transform_0(%arg0: i32, %arg1: i32) -> (i32, i32) {
    %c1_i32 = arith.constant 1 : i32
    %0 = arith.muli %arg0, %c1_i32 : i32
    %1 = arith.addi %0, %arg1 : i32
    %c0_i32 = arith.constant 0 : i32
    %c0_i32_0 = arith.constant 0 : i32
    return %1, %c0_i32 : i32, i32
  }
  func.func @transform_1(%arg0: i32, %arg1: i32) -> (i32, i32) {
    %c1_i32 = arith.constant 1 : i32
    %0 = arith.muli %arg0, %c1_i32 : i32
    %1 = arith.addi %0, %arg1 : i32
    %c0_i32 = arith.constant 0 : i32
    %c0_i32_0 = arith.constant 0 : i32
    return %1, %c0_i32 : i32, i32
  }
  func.func @transform_2(%arg0: i32, %arg1: i32) -> (i32, i32) {
    %c0_i32 = arith.constant 0 : i32
    %c0_i32_0 = arith.constant 0 : i32
    return %arg0, %c0_i32 : i32, i32
  }
}

</mosaic_0001>

<bundles_post_ra>
// kernel: tpu_custom_call.1
= control target key start
LH: loop header
LB: loop body
LE: loop exit
PB: predicated region body
PF: predicated region fallthrough
CT: control target
= control target key end

     0   :  { %7 = vsyncpa [#allocation3], 0  ;;  %s768_s0 = inlined_call_operand.hbm [shape: f32[16,128], index: 0, kind: input, shape index: {}]   ;;  %s769_s1 = inlined_call_operand.hbm [shape: f32[16,128], index: 1, kind: input, shape index: {}]   ;;  %s770_s2 = inlined_call_operand.hbm [shape: f32[16,128], index: 2, kind: output, shape index: {}]  }
   0x1   :  { %9 = vsyncpa [#allocation3 + $0x1], 0 }
   0x2   :  { %10 = vsyncpa [#allocation6], 0 }
   0x3   :  { %12 = vsyncpa [#allocation6 + $0x1], 0 }
   0x4   :  { %13 = vsyncpa [#allocation4], 0 }
   0x5   :  { %15 = vsyncpa [#allocation4 + $0x1], 0  ;;  %s602_s9 = smov 0   ;;  %s604_s10 = smov 0  }
   0x6   :  { %s606_s11 = smov 0   ;;  %s608_s12 = smov 0  }
   0x7   :  { %s610_s13 = smov 0   ;;  %s612_s14 = smov 0  }
   0x8 LB: > { %s354_s15 = sadd.s32 4294967295, %s582_s14   ;;  %s355_s16 = sadd.s32 4294967294, %s582_s14   ;;  %s582_s14 = sphi %s612_s14, %s21_s14   ;;  %s578_s13 = sphi %s610_s13, %s782_s13   ;;  %s574_s12 = sphi %s608_s12, %s781_s12   ;;  %s570_s11 = sphi %s606_s11, %s780_s11   ;;  %s566_s10 = sphi %s604_s10, %s779_s10   ;;  %s562_s9 = sphi %s602_s9, %s778_s9  }
   0x9   : > { %s33_s17 = sadd.s32 1, %s578_s13  ;;  %s42_s18 = sadd.s32 1, %s570_s11 }
   0xa   : > { %p35_p0 = scmp.ge.s32.totalorder %s33_s17, 2  ;;  %p49_p1 = scmp.ne.s32.totalorder %s570_s11, %s566_s10 }
   0xb   : > { %p50_p2 = scmp.eq.s32.totalorder %s582_s14, 0  ;;  %p55_p3 = scmp.ne.s32.totalorder %s566_s10, %s562_s9 }
   0xc   : > { %s784_s17 = smov (%p35_p0, %s33_s17), 0  ;;  %p56_p5 = scmp.eq.s32.totalorder %s354_s15, 0 }
   0xd   : > { %p643_p4 = por %p50_p2, %p49_p1  ;;  %s39_s20 = ssub.s32 %s578_s13, %s784_s17 }
   0xe   : > { %p107_p6 = scmp.eq.s32.totalorder %s354_s15, 1  ;;  %p40_p7 = scmp.eq.s32.totalorder %s39_s20, 0 }
   0xf   : > { %p649_p8 = por %p56_p5, %p55_p3  ;;  %p113_p10 = scmp.eq.s32.totalorder %s355_s16, 1 }
  0x10   : > { %p653_p9 = por %p107_p6, %p49_p1  ;;  %p387_p13 = scmp.lt.s32.totalorder %s582_s14, 2 }
  0x11   : > { %s658_s23 = scalar_select %p40_p7, %s570_s11, %s42_s18  }
  0x12   : > { %p660_p11 = por %p113_p10, %p55_p3  ;;  %s667_s25 = sand.u32 1, %s570_s11  }
  0x13   : > { %s358_s26 = sshll.u32 %s667_s25, 3  ;;  %s359_s27 = sshll.u32 %s578_s13, 7 }
  0x14   : > { %s143_s30 = scalar_lea.hbm %s768_s0, %s359_s27  ;;  %s137_s3 = scalar_lea.vmem [#allocation2], %s358_s26 }
  0x15   : > { %s145_s4 = sshll.u32 %s137_s3, 4  ;;  %p676_p0 = pnand %p387_p13, %p643_p4  ;;  %s146_s4 = int_to_ptr.vmem [resolvable:$true] %s145_s4 }
  0x16   : > { %p362_p1 = scmp.ge.s32.totalorder %s582_s14, 1  ;;  %p169_p2 = scmp.lt.s32.totalorder %s582_s14, 3 }
  0x17   : > { %s134_s6 = scalar_lea.sflag [#allocation3], %s667_s25  ;;  %p444_p3 = pneg %p676_p0 }
  0x18   : > { %s455_s7 = scalar_lea.vmem %s146_s4, 128  ;;  %s584_s8 = smov [#allocation2]  }
  0x19   : > { %p456_p5 = scmp.ne.s32.totalorder %s146_s4, %s455_s7  ;;  %s460_s15 = sshll.u32 %s584_s8, 4  ;;  %s461_s15 = int_to_ptr.vmem [resolvable:$false] %s460_s15 }
  0x1a   : > { %s462_s16 = scalar_lea.vmem %s461_s15, 256  ;;  %p463_p4 = scmp.lt.s32.totalorder %s146_s4, %s461_s15 }
  0x1b   : > { %p458_p6 = pnand %p456_p5, %p444_p3  ;;  %p464_p10 = scmp.lt.s32.totalorder %s462_s16, %s455_s7 }
  0x1d   : > { %p459_p7 = pneg %p458_p6  ;;  %p465_p13 = por %p464_p10, %p463_p4 }
  0x1f   : > { %p466_p12 = pnand %p465_p13, %p459_p7 }
  0x21   : > { %469 = shalt.err (!%p466_p12)
}
  0x22   : > { %379 = dma.hbm_to_vmem [thread:$0]  (!%p676_p0), %s143_s30, 128, %s146_s4, %s134_s6  }
  0x23   : > { %p694_p5 = pnand %p362_p1, %p169_p2  ;;  %s162_s28 = scalar_lea.hbm %s769_s1, %s359_s27 }
  0x24   : > { %s156_s29 = scalar_lea.vmem [#allocation5], %s358_s26  ;;  %s153_s7 = scalar_lea.sflag [#allocation6], %s667_s25 }
  0x25   : > { %s164_s3 = sshll.u32 %s156_s29, 4  ;;  %s585_s30 = smov [#allocation5]   ;;  %s165_s3 = int_to_ptr.vmem [resolvable:$true] %s164_s3 }
  0x26   : > { %s483_s8 = scalar_lea.vmem %s165_s3, 128  ;;  %s488_s4 = sshll.u32 %s585_s30, 4  ;;  %s489_s4 = int_to_ptr.vmem [resolvable:$false] %s488_s4 }
  0x27   : > { %p484_p12 = scmp.ne.s32.totalorder %s165_s3, %s483_s8  ;;  %s490_s6 = scalar_lea.vmem %s489_s4, 256 }
  0x28   : > { %p491_p1 = scmp.lt.s32.totalorder %s165_s3, %s489_s4  ;;  %p492_p2 = scmp.lt.s32.totalorder %s490_s6, %s483_s8 }
  0x29   : > { %p486_p6 = pnand %p484_p12, %p444_p3 }
  0x2a   : > { %p493_p4 = por %p492_p2, %p491_p1 }
  0x2b   : > { %p487_p7 = pneg %p486_p6 }
  0x2d   : > { %p494_p10 = pnand %p493_p4, %p487_p7 }
  0x2f   : > { %497 = shalt.err (!%p494_p10)
}
  0x30   : > { %382 = dma.hbm_to_vmem [thread:$0]  (!%p676_p0), %s162_s28, 128, %s165_s3, %s153_s7  }
  0x31   : > { %173 = sbr.rel (%p694_p5) target bundleno = 95 (0x5f), region = 28  ;;  %s710_s25 = sand.u32 (!%p694_p5), 1, %s566_s10  }
  0x32   : > { %s713_s26 = sshll.u32 (!%p694_p5), %s710_s25, 3  ;;  %s176_s27 = scalar_lea.sflag (!%p694_p5), [#allocation3], %s710_s25 }
  0x33   : > { %s179_s15 = scalar_lea.vmem (!%p694_p5), [#allocation2], %s713_s26 }
  0x36   : > { %549 = dma.done.wait (%p649_p8), %s176_s27, 128  }
  0x37   : > { %551 = vsyncadd (%p649_p8), %s176_s27, 4294967168  ;;  %s185_s5 = scalar_lea.sflag [#allocation6], %s710_s25  ;;  %s188_s16 = scalar_lea.vmem [#allocation5], %s713_s26 }
  0x38   : > { %553 = dma.done.wait (%p649_p8), %s185_s5, 128  }
  0x39   : > { %555 = vsyncadd (%p649_p8), %s185_s5, 4294967168  ;;  %v221_v0 = vld [vmem:[%s179_s15] sm:$0xff]  ;;  %v222_v3 = vld [vmem:[%s188_s16] sm:$0xff]  ;;  %s367_s21 = sshll.u32 %s574_s12, 7  ;;  %s213_s18 = scalar_lea.vmem [#allocation7], %s713_s26 }
  0x3a   : > { %438 = vlog2.f32 %v221_v0  ;;  %v226_v1 = vsub.f32 1.0, %v221_v0  ;;  %v231_v8 = vsub.f32 1.0, %v222_v3  ;;  %s251_s19 = sshll.u32 %s213_s18, 4  ;;  %s249_s29 = scalar_lea.hbm %s770_s2, %s367_s21  ;;  %s252_s19 = int_to_ptr.vmem [resolvable:$true] %s251_s19 }
  0x3b   : > { %s238_s3 = scalar_lea.sflag [#allocation4], %s710_s25  ;;  %s498_s7 = scalar_lea.vmem %s252_s19, 128 }
  0x3c   : > { %440 = vlog2.f32 %v226_v1  ;;  %p499_p8 = scmp.ne.s32.totalorder %s252_s19, %s498_s7  ;;  %s586_s8 = smov [#allocation7]  }
  0x3d   : > { %s502_s30 = sshll.u32 %s586_s8, 4  ;;  %s503_s30 = int_to_ptr.vmem [resolvable:$false] %s502_s30 }
  0x3e   : > { %p500_p0 = pnand %p499_p8, %p653_p9  ;;  %s504_s4 = scalar_lea.vmem %s503_s30, 256 }
  0x3f   : > { %p505_p13 = scmp.lt.s32.totalorder %s252_s19, %s503_s30  ;;  %p506_p5 = scmp.lt.s32.totalorder %s504_s4, %s498_s7 }
  0x40   : > { %p501_p3 = pneg %p500_p0 }
  0x41   : > { %p507_p12 = por %p506_p5, %p505_p13 }
  0x43   : > { %p508_p6 = pnand %p507_p12, %p501_p3 }
  0x47   : > { %v439_v2 = vpop.eup %438 }
  0x48   : > { %v224_v4 = vmul.f32 0.6931472, %v439_v2 }
  0x49   : > { %v441_v5 = vpop.eup %440 }
  0x4a   : > { %v225_v6 = vmax.f32 %v224_v4, -100.0  ;;  %v228_v7 = vmul.f32 0.6931472, %v441_v5 }
  0x4c   : > { %v229_v9 = vmax.f32 %v228_v7, -100.0  ;;  %v230_v10 = vmul.f32 %v225_v6, %v222_v3 }
  0x4e   : > { %v232_v11 = vmul.f32 %v231_v8, %v229_v9 }
  0x50   : > { %v233_v12 = vadd.f32 %v232_v11, %v230_v10 }
  0x52   : > { %236 = vst [vmem:[%s213_s18] sm:$0xff] %v233_v12 }
  0x53   : > { %511 = shalt.err (!%p508_p6)
}
  0x54   : > { %s512_s12 = scalar_lea.hbm %s249_s29, 128  ;;  %s516_s26 = scalar_lea.hbm %s770_s2, 256 }
  0x55   : > { %p513_p7 = scmp.ne.s32.totalorder %s249_s29, %s512_s12  ;;  %p517_p4 = scmp.lt.s32.totalorder %s249_s29, %s770_s2 }
  0x56   : > { %p518_p10 = scmp.lt.s32.totalorder %s516_s26, %s512_s12 }
  0x57   : > { %p514_p1 = pnand %p513_p7, %p653_p9 }
  0x58   : > { %p519_p8 = por %p518_p10, %p517_p4 }
  0x59   : > { %p515_p2 = pneg %p514_p1 }
  0x5b   : > { %p520_p0 = pnand %p519_p8, %p515_p2 }
  0x5d   : > { %523 = shalt.err (!%p520_p0)
}
  0x5e   : > { %374 = dma.vmem_to_hbm [thread:$0]  (%p653_p9), %s252_s19, 128, %s249_s29, %s238_s3  }
  0x5f PF: > { %s263_s5 = sand.u32 1, %s562_s9   ;;  %p777_p3 = scmp.ge.s32.totalorder %s582_s14, 2 }
  0x60   : > { %s264_s16 = scalar_lea.sflag [#allocation4], %s263_s5 }
  0x61   : > { %p384_p13 = pnand %p777_p3, %p660_p11 }
  0x63   : > { %p385_p5 = pneg %p384_p13 }
  0x65   : > { %557 = dma.done.wait (%p385_p5), %s264_s16, 128  }
  0x66   : > { %559 = vsyncadd (%p385_p5), %s264_s16, 4294967168  ;;  %s21_s14 = sadd.s32 1, %s582_s14   ;;  %s778_s9 = smov %s566_s10 }
  0x67   : > { %p18_p12 = scmp.ge.s32.totalorder %s21_s14, 4   ;;  %s779_s10 = smov %s570_s11 }
  0x68   : > { %s780_s11 = smov %s658_s23  ;;  %s781_s12 = smov %s578_s13 }
  0x69   : > { %s782_s13 = smov %s784_s17  ;;  %20 = sbr.rel (!%p18_p12) target bundleno = 8 (0x8), region = 90 }
  0x6e   :  { %269 = vsyncpa [#allocation3], 1 }
  0x6f   :  { %271 = vsyncpa [#allocation3 + $0x1], 1 }
  0x70   :  { %272 = vsyncpa [#allocation6], 1 }
  0x71   :  { %274 = vsyncpa [#allocation6 + $0x1], 1 }
  0x72   :  { %275 = vsyncpa [#allocation4], 1 }
  0x73   :  { %277 = vsyncpa [#allocation4 + $0x1], 1 }

</bundles_post_ra>
